<compile_context>
chip_gen: v6e
topology: v6e:2x2x1
jax: 0.10.0
libtpu: 0.0.40
codegen_flags: <defaults>
</compile_context>

<pallas_src>
import functools

import jax
import jax.numpy as jnp
from jax.experimental import pallas as pl
from jax.experimental.pallas import tpu as pltpu


def _bias_add_kernel(x_ref, b_ref, o_ref):
    # x_ref: (TR, TC), b_ref: (1, TC) -> sublane-broadcast add on the VPU.
    o_ref[...] = x_ref[...] + b_ref[...]


def _sublane_multiple(dtype):
    # f32 -> 8, bf16/f16 -> 16, int8/fp8 -> 32 packed sublanes per vreg tile.
    return max(8, 32 // jnp.dtype(dtype).itemsize)


@functools.partial(jax.jit, donate_argnums=(0,))
def learnable_bias_forward(x, bias):
    """x: (N, C, H, W); bias: (1, C, 1, 1) -> x + bias.expand_as(x)."""
    N, C, H, W = x.shape
    chw = C * H * W
    eb = jnp.dtype(x.dtype).itemsize
    sub = _sublane_multiple(x.dtype)
    del sub  # row block below is either the full dim or 512 (mult. of 8/16/32)

    # Flatten to (N, C*H*W); bias becomes one small (1, chw) row in x.dtype.
    x2d = x.reshape(N, chw)
    b_row = jnp.broadcast_to(
        bias.reshape(C, 1).astype(x.dtype), (C, H * W)
    ).reshape(1, chw)

    # Row block: min(N, 512) is always a legal block size — either the full
    # sublane dim, or 512, which is a multiple of every dtype's sublane pack.
    TR = N if N <= 512 else 512

    # Lane block: ~8 MiB per block, a multiple of 128 lanes (or the full dim).
    block_budget = 8 << 20
    tc_cap = max(128, (block_budget // (TR * eb)) // 128 * 128)
    TC = chw if chw <= tc_cap else tc_cap

    # cdiv grid: partial edge blocks are clipped/masked by Pallas (no padding
    # of the slab, no post-slice).
    grid = (pl.cdiv(N, TR), pl.cdiv(chw, TC))

    out2d = pl.pallas_call(
        _bias_add_kernel,
        out_shape=jax.ShapeDtypeStruct((N, chw), x.dtype),
        grid_spec=pltpu.PrefetchScalarGridSpec(
            num_scalar_prefetch=0,
            grid=grid,
            in_specs=[
                pl.BlockSpec((TR, TC), lambda i, j: (i, j)),
                # Bias block index independent of the row axis: the tiny
                # (1, TC) tile is reused across all row blocks.
                pl.BlockSpec((1, TC), lambda i, j: (0, j)),
            ],
            out_specs=pl.BlockSpec((TR, TC), lambda i, j: (i, j)),
        ),
        compiler_params=pltpu.CompilerParams(
            # Purely elementwise: both grid axes are independent, so either
            # can shard across the two TensorCores on v7x.
            dimension_semantics=("parallel", "parallel"),
            # ~32 MiB double-buffered working set; leave headroom below v7x's
            # 64 MiB physical VMEM for Mosaic internal scratch.
            vmem_limit_bytes=48 << 20,
        ),
        # x += broadcast(bias): alias input 0 (x2d) to the output so no second
        # full-size HBM buffer is allocated/written.
        input_output_aliases={0: 0},
    )(x2d, b_row)

    return out2d.reshape(N, C, H, W)


if __name__ == "__main__":
    key = jax.random.PRNGKey(0)
    kx, kb = jax.random.split(key)

    # Shapes consistent with the module: batch=2, channels=4, spatial=16.
    N, C, H, W = 2, 4, 16, 16
    x = jax.random.normal(kx, (N, C, H, W), dtype=jnp.float32)
    # Module initializes bias to zeros; use small deterministic nonzero values
    # so the broadcast path is actually exercised.
    bias = (jnp.arange(C, dtype=jnp.float32) * 0.1).reshape(1, C, 1, 1)

    # Reference computed BEFORE the kernel call: x is donated to the kernel.
    ref = x + bias
    out = jax.block_until_ready(learnable_bias_forward(x, bias))
    assert out.shape == ref.shape and out.dtype == ref.dtype
    assert jnp.allclose(out, ref, atol=1e-6), "mismatch vs reference"

    # Non-128-aligned spatial extent + bf16 path (full-dim partial blocks,
    # bias dtype cast).  Kernel adds in x.dtype (bf16), so the reference does
    # the same — no silent f32 accumulate is claimed.
    x2 = jax.random.normal(kb, (2, 3, 7, 7), dtype=jnp.bfloat16)
    b2 = (jnp.arange(3, dtype=jnp.float32) * 0.25 - 0.25).reshape(1, 3, 1, 1)
    ref2 = x2 + b2.astype(jnp.bfloat16)
    out2 = jax.block_until_ready(learnable_bias_forward(x2, b2))
    assert out2.shape == ref2.shape and out2.dtype == ref2.dtype
    assert jnp.allclose(
        out2.astype(jnp.float32), ref2.astype(jnp.float32), atol=1e-2
    ), "bf16 mismatch vs reference"

    print("KERNEL_OK")
</pallas_src>

<mosaic_0001>
module attributes {stable_mosaic.version = 11 : i64} {
  func.func @_bias_add_kernel(%arg0: i32, %arg1: i32, %arg2: memref<2x1024xf32, #tpu.memory_space<vmem>>, %arg3: memref<1x1024xf32, #tpu.memory_space<vmem>>, %arg4: memref<2x1024xf32, #tpu.memory_space<vmem>>) attributes {dimension_semantics = [#tpu.dimension_semantics<parallel>, #tpu.dimension_semantics<parallel>], iteration_bounds = array<i64: 1, 1>, scalar_prefetch = 0 : i64, scratch_operands = 0 : i64, tpu.core_type = #tpu.core_type<tc>, window_params = [{transform_indices = @transform_0, window_bounds = array<i64: 2, 1024>}, {transform_indices = @transform_1, window_bounds = array<i64: 1, 1024>}, {transform_indices = @transform_2, window_bounds = array<i64: 2, 1024>}]} {
    %c0 = arith.constant 0 : index
    %c0_0 = arith.constant 0 : index
    %0 = vector.load %arg2[%c0, %c0_0] : memref<2x1024xf32, #tpu.memory_space<vmem>>, vector<2x1024xf32>
    %c0_1 = arith.constant 0 : index
    %c0_2 = arith.constant 0 : index
    %1 = vector.load %arg3[%c0_1, %c0_2] : memref<1x1024xf32, #tpu.memory_space<vmem>>, vector<1x1024xf32>
    %2 = vector.broadcast %1 : vector<1x1024xf32> to vector<2x1024xf32>
    %3 = arith.addf %0, %2 : vector<2x1024xf32>
    %c0_3 = arith.constant 0 : index
    %c0_4 = arith.constant 0 : index
    %4 = vector.load %arg4[%c0_3, %c0_4] : memref<2x1024xf32, #tpu.memory_space<vmem>>, vector<2x1024xf32>
    tpu.vector_store %arg4[%c0_3, %c0_4], %3 {strides = array<i32>} : memref<2x1024xf32, #tpu.memory_space<vmem>>, vector<2x1024xf32>,
    return
  }
  func.func @transform_0(%arg0: i32, %arg1: i32) -> (i32, i32) {
    %c0_i32 = arith.constant 0 : i32
    return %arg0, %arg1 : i32, i32
  }
  func.func @transform_1(%arg0: i32, %arg1: i32) -> (i32, i32) {
    %c0_i32 = arith.constant 0 : i32
    %c0_i32_0 = arith.constant 0 : i32
    return %c0_i32, %arg1 : i32, i32
  }
  func.func @transform_2(%arg0: i32, %arg1: i32) -> (i32, i32) {
    %c0_i32 = arith.constant 0 : i32
    return %arg0, %arg1 : i32, i32
  }
}

</mosaic_0001>

<bundles_post_ra>
// kernel: learnable_bias_forward.1
= control target key start
LH: loop header
LB: loop body
LE: loop exit
PB: predicated region body
PF: predicated region fallthrough
CT: control target
= control target key end

     0   :  { %v15_v0 = vlaneseq  ;;  %v92_v1 = vmov 1983009808   ;;  %s123_s1 = inlined_call_operand.vmem [shape: f32[1,1024], index: 1, kind: input, shape index: {}]   ;;  %s124_s0 = inlined_call_operand.vmem [shape: f32[2,1024], index: 0, kind: input, shape index: {}, may-alias: {0,2}]   ;;  %s125_s2 = inlined_call_operand.vmem [shape: f32[2,1024], index: 2, kind: output, shape index: {}, may-alias: {0,2}]  }
   0x1   :  { %v50_v2 = vunpack.c.l.s4 %v92_v1  ;;  %v13_v4 = vld [vmem:[%s123_s1] sm:$0xff]  ;;  %v12_v34 = vld [vmem:[%s124_s0 + $0x8] sm:$0xff] }
   0x2   :  { %v16_v3 = vshrl.u32 %v15_v0, 7  ;;  %v11_v28 = vld [vmem:[%s124_s0] sm:$0xff] }
   0x3   :  { %v51_v5 = vunpack.c.0.s8 %v50_v2 }
   0x4   :  { %v17_v6 = vsub.s32 0, %v16_v3  ;;  %v21_v7 = vsub.s32 1, %v16_v3  ;;  %v25_v8 = vsub.s32 2, %v16_v3  ;;  %v29_v9 = vsub.s32 3, %v16_v3 }
   0x5   :  { %v54_v10 = vsub.s32 %v51_v5, %v16_v3  ;;  %v33_v11 = vsub.s32 4, %v16_v3  ;;  %v37_v12 = vsub.s32 5, %v16_v3  ;;  %v41_v13 = vsub.s32 6, %v16_v3 }
   0x6   :  { %v18_v14 = vrot.slane %v13_v4, %v17_v6  ;;  %v22_v15 = vrot.slane %v13_v4, %v21_v7  ;;  %v26_v16 = vrot.slane %v13_v4, %v25_v8  ;;  %v30_v17 = vrot.slane %v13_v4, %v29_v9 }
   0x7   :  { %v34_v18 = vrot.slane %v13_v4, %v33_v11  ;;  %v38_v19 = vrot.slane %v13_v4, %v37_v12  ;;  %v42_v20 = vrot.slane %v13_v4, %v41_v13  ;;  %v45_v21 = vsub.s32 7, %v16_v3 }
   0x8   :  { %v47_v22 = vcombine.low %v18_v14, %v22_v15  ;;  %v48_v23 = vcombine.low %v26_v16, %v30_v17 }
   0x9   :  { %v46_v24 = vrot.slane %v13_v4, %v45_v21  ;;  %v64_v25 = vcombine.low %v34_v18, %v38_v19 }
   0xa   :  { %v55_v26 = vrot.slane %v47_v22, %v54_v10  ;;  %v62_v27 = vrot.slane %v48_v23, %v54_v10 }
   0xb   :  { %v65_v29 = vcombine.low %v42_v20, %v46_v24  ;;  %v72_v30 = vrot.slane %v64_v25, %v54_v10 }
   0xc   :  { %v63_v31 = vcombine.low %v55_v26, %v62_v27 }
   0xd   :  { %v79_v32 = vrot.slane %v65_v29, %v54_v10 }
   0xe   :  { %v83_v33 = vadd.f32 %v63_v31, %v11_v28 }
   0xf   :  { %v80_v35 = vcombine.low %v72_v30, %v79_v32 }
  0x10   :  { %85 = vst [vmem:[%s125_s2] sm:$0xff] %v83_v33 }
  0x11   :  { %v84_v36 = vadd.f32 %v80_v35, %v12_v34 }
  0x13   :  { %86 = vst [vmem:[%s125_s2 + $0x8] sm:$0xff] %v84_v36 }

</bundles_post_ra>
